<compile_context>
chip_gen: v5e
topology: v5e:2x2
jax: 0.10.0
libtpu: 0.0.40
codegen_flags: <defaults>
</compile_context>

<pallas_src>
import functools

import jax
import jax.numpy as jnp
from jax.experimental import pallas as pl
from jax.experimental.pallas import tpu as pltpu


def _round_up(x, m):
    return ((x + m - 1) // m) * m


def _mlp_kernel(n_inputs, n_layers, *refs):
    """Fused MLP forward for one lane-dense batch tile.

    refs = (x_0, ..., x_{n_inputs-1},            # each (1, tile_n)
            W_0, b_0, ..., W_{L-1}, b_{L-1},     # W_l: (out_l, in_l), b_l: (out_l, 1)
            out_ref)                             # (out_dim, tile_n)
    """
    x_refs = refs[:n_inputs]
    out_ref = refs[-1]
    wb_refs = refs[n_inputs:-1]

    # ---- Layer 0 (input layer): in_dim broadcast FMAs on the VPU ----------
    w0 = wb_refs[0][...]                      # (n0, in_dim), tiny
    b0 = wb_refs[1][...]                      # (n0, 1)
    h = w0[:, 0:1] * x_refs[0][...] + b0      # (n0,1)*(1,tile_n) -> (n0,tile_n)
    for k in range(1, n_inputs):
        h = h + w0[:, k:k + 1] * x_refs[k][...]
    if n_layers > 1:                          # activation after input layer
        h = jnp.tanh(h)

    # ---- Hidden + output layers: lane-dense MXU matmuls --------------------
    for li in range(1, n_layers):
        w = wb_refs[2 * li][...]              # (out_l, in_l)
        b = wb_refs[2 * li + 1][...]          # (out_l, 1)
        h = jnp.dot(w, h, preferred_element_type=jnp.float32) + b
        if li != n_layers - 1:                # no activation after output layer
            h = jnp.tanh(h)

    out_ref[...] = h.astype(out_ref.dtype)


def mlp_forward(inputs, weights, biases, *, tile_n=None):
    """Equivalent of Net.forward(inputs) with transform_func=None.

    inputs : list of 1-D arrays, each of length N (one per input feature).
    weights: list of (out_features, in_features) arrays (torch Linear layout).
    biases : list of (out_features,) arrays.
    Returns (N, output_size), matching the PyTorch module.
    """
    in_dim = len(inputs)
    N = int(inputs[0].shape[0])
    n_layers = len(weights)
    out_dim = int(weights[-1].shape[0])

    # Tile choice: big lane-dense tiles (amortize per-step overhead), but keep
    # >=2 grid steps when the batch allows it (v7x megacore sharding).
    if tile_n is None:
        tile_n = min(2048, _round_up(max((N + 1) // 2, 1), 128))
    N_pad = _round_up(N, tile_n)

    # Per-feature rows, samples on lanes.  reshape (N,) -> (1, N) is free;
    # zero-pad the tail tile if needed (sliced off after the kernel).
    xs = []
    for t in inputs:
        t = jnp.asarray(t, jnp.float32).reshape(-1)
        if N_pad != N:
            t = jnp.pad(t, (0, N_pad - N))
        xs.append(t.reshape(1, N_pad))

    grid = (N_pad // tile_n,)

    in_specs = [pl.BlockSpec((1, tile_n), lambda i: (0, i)) for _ in range(in_dim)]
    wb_args = []
    for w, b in zip(weights, biases):
        w = jnp.asarray(w, jnp.float32)
        b2 = jnp.asarray(b, jnp.float32).reshape(-1, 1)
        # Full-array blocks with constant index_map -> stay resident in VMEM.
        in_specs.append(pl.BlockSpec(w.shape, lambda i: (0, 0)))
        in_specs.append(pl.BlockSpec(b2.shape, lambda i: (0, 0)))
        wb_args += [w, b2]

    out_spec = pl.BlockSpec((out_dim, tile_n), lambda i: (0, i))

    out_t = pl.pallas_call(
        functools.partial(_mlp_kernel, in_dim, n_layers),
        out_shape=jax.ShapeDtypeStruct((out_dim, N_pad), jnp.float32),
        grid=grid,
        in_specs=in_specs,
        out_specs=out_spec,
        compiler_params=pltpu.CompilerParams(
            dimension_semantics=("parallel",)
        ),
    )(*xs, *wb_args)

    # Back to torch layout: (N, out_dim).  For out_dim==1 this is just a reshape.
    return out_t[:, :N].T


def init_net_params(key, input_size, neurons_arr, output_size, depth):
    """Deterministic params matching Net.__init__ / Net.init_weights.

    Layer sizes:
      input:  Linear(input_size, neurons_arr[0])
      hidden_i (i in range(depth)): Linear(neurons_arr[i], neurons_arr[i+1])
      output: Linear(neurons_arr[-1], output_size)
    Xavier-uniform weights, biases filled with 0.01.
    Weights returned in torch layout: (out_features, in_features).
    """
    dims = [input_size, neurons_arr[0]]
    for i in range(depth):
        dims.append(neurons_arr[i + 1])
    dims.append(output_size)

    weights, biases = [], []
    for li in range(len(dims) - 1):
        fan_in, fan_out = dims[li], dims[li + 1]
        key, sub = jax.random.split(key)
        limit = jnp.sqrt(6.0 / (fan_in + fan_out))
        w = jax.random.uniform(
            sub, (fan_out, fan_in), jnp.float32, minval=-limit, maxval=limit
        )
        b = jnp.full((fan_out,), 0.01, jnp.float32)
        weights.append(w)
        biases.append(b)
    return weights, biases


if __name__ == "__main__":
    # Net(input_size=2, neurons_arr=[32, 32, 32], output_size=1, depth=2, act=nn.Tanh)
    input_size = 2
    neurons_arr = [32, 32, 32]
    output_size = 1
    depth = 2
    N = 256  # number of samples (length of each 1-D input tensor)

    key = jax.random.PRNGKey(0)
    key, kx = jax.random.split(key)
    # `inputs` list: input_size separate 1-D arrays of length N
    xs = jax.random.normal(kx, (input_size, N), jnp.float32)
    inputs = [xs[i] for i in range(input_size)]

    weights, biases = init_net_params(
        key, input_size, neurons_arr, output_size, depth
    )

    out = mlp_forward(inputs, weights, biases)
    out = jax.block_until_ready(out)

    # Pure-JAX reference check (mirrors the torch forward exactly).
    x = jnp.concatenate([jnp.reshape(t, (-1, 1)) for t in inputs], axis=1)
    h = x
    for li, (w, b) in enumerate(zip(weights, biases)):
        h = h @ w.T + b
        if li != len(weights) - 1:
            h = jnp.tanh(h)
    assert out.shape == (N, output_size)
    assert jnp.allclose(out, h, atol=1e-4), "kernel mismatch vs reference"

    print("KERNEL_OK")
</pallas_src>

<mosaic_0001>
module attributes {stable_mosaic.version = 11 : i64} {
  func.func @_mlp_kernel(%arg0: i32, %arg1: memref<1x128xf32, #tpu.memory_space<vmem>>, %arg2: memref<1x128xf32, #tpu.memory_space<vmem>>, %arg3: memref<32x2xf32, #tpu.memory_space<vmem>>, %arg4: memref<32x1xf32, #tpu.memory_space<vmem>>, %arg5: memref<32x32xf32, #tpu.memory_space<vmem>>, %arg6: memref<32x1xf32, #tpu.memory_space<vmem>>, %arg7: memref<32x32xf32, #tpu.memory_space<vmem>>, %arg8: memref<32x1xf32, #tpu.memory_space<vmem>>, %arg9: memref<1x32xf32, #tpu.memory_space<vmem>>, %arg10: memref<1x1xf32, #tpu.memory_space<vmem>>, %arg11: memref<1x128xf32, #tpu.memory_space<vmem>>) attributes {dimension_semantics = [#tpu.dimension_semantics<parallel>], iteration_bounds = array<i64: 2>, scalar_prefetch = 0 : i64, scratch_operands = 0 : i64, tpu.core_type = #tpu.core_type<tc>, window_params = [{transform_indices = @transform_0, window_bounds = array<i64: 1, 128>}, {transform_indices = @transform_1, window_bounds = array<i64: 1, 128>}, {pipeline_mode = #tpu.pipeline_mode<synchronous>, transform_indices = @transform_2, window_bounds = array<i64: 32, 2>}, {pipeline_mode = #tpu.pipeline_mode<synchronous>, transform_indices = @transform_3, window_bounds = array<i64: 32, 1>}, {pipeline_mode = #tpu.pipeline_mode<synchronous>, transform_indices = @transform_4, window_bounds = array<i64: 32, 32>}, {pipeline_mode = #tpu.pipeline_mode<synchronous>, transform_indices = @transform_5, window_bounds = array<i64: 32, 1>}, {pipeline_mode = #tpu.pipeline_mode<synchronous>, transform_indices = @transform_6, window_bounds = array<i64: 32, 32>}, {pipeline_mode = #tpu.pipeline_mode<synchronous>, transform_indices = @transform_7, window_bounds = array<i64: 32, 1>}, {pipeline_mode = #tpu.pipeline_mode<synchronous>, transform_indices = @transform_8, window_bounds = array<i64: 1, 32>}, {pipeline_mode = #tpu.pipeline_mode<synchronous>, transform_indices = @transform_9, window_bounds = array<i64: 1, 1>}, {transform_indices = @transform_10, window_bounds = array<i64: 1, 128>}]} {
    %c0 = arith.constant 0 : index
    %c0_0 = arith.constant 0 : index
    %0 = vector.load %arg3[%c0, %c0_0] : memref<32x2xf32, #tpu.memory_space<vmem>>, vector<32x2xf32>
    %c0_1 = arith.constant 0 : index
    %c0_2 = arith.constant 0 : index
    %1 = vector.load %arg4[%c0_1, %c0_2] : memref<32x1xf32, #tpu.memory_space<vmem>>, vector<32x1xf32>
    %2 = vector.extract_strided_slice %0 {offsets = [0, 0], sizes = [32, 1], strides = [1, 1]} : vector<32x2xf32> to vector<32x1xf32>
    %c0_3 = arith.constant 0 : index
    %c0_4 = arith.constant 0 : index
    %3 = vector.load %arg1[%c0_3, %c0_4] : memref<1x128xf32, #tpu.memory_space<vmem>>, vector<1x128xf32>
    %4 = vector.broadcast %2 : vector<32x1xf32> to vector<32x128xf32>
    %5 = vector.broadcast %3 : vector<1x128xf32> to vector<32x128xf32>
    %6 = arith.mulf %4, %5 : vector<32x128xf32>
    %7 = vector.broadcast %1 : vector<32x1xf32> to vector<32x128xf32>
    %8 = arith.addf %6, %7 : vector<32x128xf32>
    %9 = vector.extract_strided_slice %0 {offsets = [0, 1], sizes = [32, 1], strides = [1, 1]} : vector<32x2xf32> to vector<32x1xf32>
    %c0_5 = arith.constant 0 : index
    %c0_6 = arith.constant 0 : index
    %10 = vector.load %arg2[%c0_5, %c0_6] : memref<1x128xf32, #tpu.memory_space<vmem>>, vector<1x128xf32>
    %11 = vector.broadcast %9 : vector<32x1xf32> to vector<32x128xf32>
    %12 = vector.broadcast %10 : vector<1x128xf32> to vector<32x128xf32>
    %13 = arith.mulf %11, %12 : vector<32x128xf32>
    %14 = arith.addf %8, %13 : vector<32x128xf32>
    %15 = math.tanh %14 : vector<32x128xf32>
    %c0_7 = arith.constant 0 : index
    %c0_8 = arith.constant 0 : index
    %16 = vector.load %arg5[%c0_7, %c0_8] : memref<32x32xf32, #tpu.memory_space<vmem>>, vector<32x32xf32>
    %c0_9 = arith.constant 0 : index
    %c0_10 = arith.constant 0 : index
    %17 = vector.load %arg6[%c0_9, %c0_10] : memref<32x1xf32, #tpu.memory_space<vmem>>, vector<32x1xf32>
    %cst = arith.constant dense<0.000000e+00> : vector<32x128xf32>
    %18 = tpu.matmul %16, %15, %cst {dimension_numbers = #tpu.dot_dimension_numbers<[1], [0], [0], [1], [0, 0, 1, 1], [], []>} : vector<32x32xf32>, vector<32x128xf32>, vector<32x128xf32> -> vector<32x128xf32>
    %19 = vector.broadcast %17 : vector<32x1xf32> to vector<32x128xf32>
    %20 = arith.addf %18, %19 : vector<32x128xf32>
    %21 = math.tanh %20 : vector<32x128xf32>
    %c0_11 = arith.constant 0 : index
    %c0_12 = arith.constant 0 : index
    %22 = vector.load %arg7[%c0_11, %c0_12] : memref<32x32xf32, #tpu.memory_space<vmem>>, vector<32x32xf32>
    %c0_13 = arith.constant 0 : index
    %c0_14 = arith.constant 0 : index
    %23 = vector.load %arg8[%c0_13, %c0_14] : memref<32x1xf32, #tpu.memory_space<vmem>>, vector<32x1xf32>
    %cst_15 = arith.constant dense<0.000000e+00> : vector<32x128xf32>
    %24 = tpu.matmul %22, %21, %cst_15 {dimension_numbers = #tpu.dot_dimension_numbers<[1], [0], [0], [1], [0, 0, 1, 1], [], []>} : vector<32x32xf32>, vector<32x128xf32>, vector<32x128xf32> -> vector<32x128xf32>
    %25 = vector.broadcast %23 : vector<32x1xf32> to vector<32x128xf32>
    %26 = arith.addf %24, %25 : vector<32x128xf32>
    %27 = math.tanh %26 : vector<32x128xf32>
    %c0_16 = arith.constant 0 : index
    %c0_17 = arith.constant 0 : index
    %28 = vector.load %arg9[%c0_16, %c0_17] : memref<1x32xf32, #tpu.memory_space<vmem>>, vector<1x32xf32>
    %c0_18 = arith.constant 0 : index
    %c0_19 = arith.constant 0 : index
    %29 = vector.load %arg10[%c0_18, %c0_19] : memref<1x1xf32, #tpu.memory_space<vmem>>, vector<1x1xf32>
    %cst_20 = arith.constant dense<0.000000e+00> : vector<1x128xf32>
    %30 = tpu.matmul %28, %27, %cst_20 {dimension_numbers = #tpu.dot_dimension_numbers<[1], [0], [0], [1], [0, 0, 1, 1], [], []>} : vector<1x32xf32>, vector<32x128xf32>, vector<1x128xf32> -> vector<1x128xf32>
    %31 = vector.broadcast %29 : vector<1x1xf32> to vector<1x128xf32>
    %32 = arith.addf %30, %31 : vector<1x128xf32>
    %c0_21 = arith.constant 0 : index
    %c0_22 = arith.constant 0 : index
    %33 = vector.load %arg11[%c0_21, %c0_22] : memref<1x128xf32, #tpu.memory_space<vmem>>, vector<1x128xf32>
    tpu.vector_store %arg11[%c0_21, %c0_22], %32 {strides = array<i32>} : memref<1x128xf32, #tpu.memory_space<vmem>>, vector<1x128xf32>,
    return
  }
  func.func @transform_0(%arg0: i32) -> (i32, i32) {
    %c0_i32 = arith.constant 0 : i32
    %c0_i32_0 = arith.constant 0 : i32
    return %c0_i32, %arg0 : i32, i32
  }
  func.func @transform_1(%arg0: i32) -> (i32, i32) {
    %c0_i32 = arith.constant 0 : i32
    %c0_i32_0 = arith.constant 0 : i32
    return %c0_i32, %arg0 : i32, i32
  }
  func.func @transform_2(%arg0: i32) -> (i32, i32) {
    %c0_i32 = arith.constant 0 : i32
    %c0_i32_0 = arith.constant 0 : i32
    %c0_i32_1 = arith.constant 0 : i32
    return %c0_i32, %c0_i32_0 : i32, i32
  }
  func.func @transform_3(%arg0: i32) -> (i32, i32) {
    %c0_i32 = arith.constant 0 : i32
    %c0_i32_0 = arith.constant 0 : i32
    %c0_i32_1 = arith.constant 0 : i32
    return %c0_i32, %c0_i32_0 : i32, i32
  }
  func.func @transform_4(%arg0: i32) -> (i32, i32) {
    %c0_i32 = arith.constant 0 : i32
    %c0_i32_0 = arith.constant 0 : i32
    %c0_i32_1 = arith.constant 0 : i32
    return %c0_i32, %c0_i32_0 : i32, i32
  }
  func.func @transform_5(%arg0: i32) -> (i32, i32) {
    %c0_i32 = arith.constant 0 : i32
    %c0_i32_0 = arith.constant 0 : i32
    %c0_i32_1 = arith.constant 0 : i32
    return %c0_i32, %c0_i32_0 : i32, i32
  }
  func.func @transform_6(%arg0: i32) -> (i32, i32) {
    %c0_i32 = arith.constant 0 : i32
    %c0_i32_0 = arith.constant 0 : i32
    %c0_i32_1 = arith.constant 0 : i32
    return %c0_i32, %c0_i32_0 : i32, i32
  }
  func.func @transform_7(%arg0: i32) -> (i32, i32) {
    %c0_i32 = arith.constant 0 : i32
    %c0_i32_0 = arith.constant 0 : i32
    %c0_i32_1 = arith.constant 0 : i32
    return %c0_i32, %c0_i32_0 : i32, i32
  }
  func.func @transform_8(%arg0: i32) -> (i32, i32) {
    %c0_i32 = arith.constant 0 : i32
    %c0_i32_0 = arith.constant 0 : i32
    %c0_i32_1 = arith.constant 0 : i32
    return %c0_i32, %c0_i32_0 : i32, i32
  }
  func.func @transform_9(%arg0: i32) -> (i32, i32) {
    %c0_i32 = arith.constant 0 : i32
    %c0_i32_0 = arith.constant 0 : i32
    %c0_i32_1 = arith.constant 0 : i32
    return %c0_i32, %c0_i32_0 : i32, i32
  }
  func.func @transform_10(%arg0: i32) -> (i32, i32) {
    %c0_i32 = arith.constant 0 : i32
    %c0_i32_0 = arith.constant 0 : i32
    return %c0_i32, %arg0 : i32, i32
  }
}

</mosaic_0001>

<bundles_post_ra>
// kernel: tpu_custom_call.1
= control target key start
LH: loop header
LB: loop body
LE: loop exit
PB: predicated region body
PF: predicated region fallthrough
CT: control target
= control target key end

     0   :  { %s1121_s0 = inlined_call_operand.vmem [shape: f32[1,256], index: 0, kind: input, shape index: {}]   ;;  %s1122_s1 = inlined_call_operand.vmem [shape: f32[1,256], index: 1, kind: input, shape index: {}]   ;;  %s1123_s2 = inlined_call_operand.vmem [shape: f32[32,2], index: 2, kind: input, shape index: {}]   ;;  %s1124_s3 = inlined_call_operand.vmem [shape: f32[32,1], index: 3, kind: input, shape index: {}]   ;;  %s1125_s4 = inlined_call_operand.vmem [shape: f32[32,32], index: 4, kind: input, shape index: {}]   ;;  %s1126_s5 = inlined_call_operand.vmem [shape: f32[32,1], index: 5, kind: input, shape index: {}]   ;;  %s1127_s6 = inlined_call_operand.vmem [shape: f32[32,32], index: 6, kind: input, shape index: {}]   ;;  %s1128_s7 = inlined_call_operand.vmem [shape: f32[32,1], index: 7, kind: input, shape index: {}]   ;;  %s1129_s8 = inlined_call_operand.vmem [shape: f32[1,32], index: 8, kind: input, shape index: {}]   ;;  %s1130_s9 = inlined_call_operand.<no memory space> [shape: f32[1,1], index: 9, kind: input, shape index: {}]   ;;  %s1131_s10 = inlined_call_operand.hbm [shape: f32[1,256], index: 10, kind: output, shape index: {}]  }
   0x1   :  { %v15_v0 = vstv %s1130_s9 }
   0x2   :  { %16 = vst [vmem:[#allocation2] sm:$0x1] %v15_v0 }
   0x3   :  { %17 = vsyncpa [#allocation4], 0 }
   0x4   :  { %19 = vsyncpa [#allocation4 + $0x1], 0  ;;  %s935_s15 = smov 0   ;;  %s937_s16 = smov 0  }
   0x5   :  { %s939_s17 = smov 0   ;;  %s941_s18 = smov 0  }
   0x6 LB: > { %s956_s9 = sadd.s32 4294967295, %s873_s18   ;;  %s712_s19 = sadd.s32 4294967294, %s873_s18   ;;  %s873_s18 = sphi %s941_s18, %s1137_s18   ;;  %s869_s17 = sphi %s939_s17, %s1136_s17   ;;  %s865_s16 = sphi %s937_s16, %s1135_s16   ;;  %s861_s15 = sphi %s935_s15, %s1134_s15  }
   0x7   : > { %s960_s20 = sadd.s32 1, %s873_s18   ;;  %s252_s21 = sadd.s32 1, %s869_s17 }
   0x8   : > { %s249_s22 = ssub.s32 %s873_s18, %s960_s20  ;;  %p262_p0 = scmp.ne.s32.totalorder %s869_s17, %s865_s16 }
   0x9   : > { %p250_p1 = scmp.eq.s32.totalorder %s249_s22, 0  ;;  %p263_p2 = scmp.eq.s32.totalorder %s956_s9, 1 }
   0xa   : > { %p268_p3 = scmp.ne.s32.totalorder %s865_s16, %s861_s15  ;;  %p269_p4 = scmp.eq.s32.totalorder %s712_s19, 1 }
   0xb   : > { %s971_s23 = scalar_select %p250_p1, %s869_s17, %s252_s21  }
   0xc   : > { %p973_p5 = por %p263_p2, %p262_p0  ;;  %p977_p6 = por %p269_p4, %p268_p3 }
   0xd   : > { %p715_p7 = scmp.ge.s32.totalorder %s873_s18, 1  ;;  %p323_p8 = scmp.lt.s32.totalorder %s873_s18, 3 }
   0xf   : > { %p324_p9 = pnand %p715_p7, %p323_p8 }
  0x10   : > { %p361_p10 = scmp.lt.s32.totalorder (!%p324_p9), %s956_s9, 1  ;;  %s647_s14 = scalar_lea.hbm (!%p324_p9), %s1131_s10, %s956_s9 }
  0x11   : > { %327 = sbr.rel (%p324_p9) target bundleno = 640 (0x280), region = 60  ;;  %s651_s27 = sshll.u32 (!%p324_p9), %s647_s14, 4  ;;  %s652_s27 = int_to_ptr.hbm [resolvable:$true] %s651_s27 }
  0x12   : > { %s825_s29 = sshra.s32 (!%p324_p9), %s652_s27, 4  ;;  %s826_s29 = int_to_ptr.hbm [resolvable:$true] %s825_s29 }
  0x13   : > { %s827_s30 = scalar_lea.hbm (!%p324_p9), %s826_s29, 1  ;;  %p832_p0 = scmp.lt.s32.totalorder (!%p324_p9), %s826_s29, %s1131_s10 }
  0x14   : > { %p828_p11 = scmp.ne.s32.totalorder (!%p324_p9), %s826_s29, %s827_s30 }
  0x16   : > { %v374_v1 = vld [vmem:[%s1124_s3 + $0x18] sm:$0xff]  ;;  %v368_v3 = vld [vmem:[%s1123_s2 + $0x8] sm:$0xff]  ;;  %v875_v4 = vmov 0   ;;  %s994_s12 = scalar_select %p361_p10, %s956_s9, 1  ;;  %v369_v5 = vld [vmem:[%s1123_s2 + $0x10] sm:$0xff]  ;;  %v876_v7 = vmov 1  }
  0x17   : > { %v370_v2 = vld [vmem:[%s1123_s2 + $0x18] sm:$0xff]  ;;  %779 = vset.pattern.permute.xlu2 %v875_v4  ;;  %777 = vset.pattern.permute.xlu1 %v875_v4  ;;  %v373_v6 = vld [vmem:[%s1124_s3 + $0x10] sm:$0xff]  ;;  %v372_v8 = vld [vmem:[%s1124_s3 + $0x8] sm:$0xff]  ;;  %vm487_vm0 = vcmask 261120   ;;  %p829_p12 = pnand %p828_p11, %p973_p5 }
  0x18   : > { %776 = vset.pattern.permute.xlu0 %v875_v4  ;;  %420 = vperm.xlu1 %777, %v374_v1   ;;  %s363_s19 = scalar_lea.vmem %s1121_s0, %s994_s12  ;;  %s366_s26 = scalar_lea.vmem %s1122_s1, %s994_s12  ;;  %v367_v9 = vld [vmem:[%s1123_s2] sm:$0xff]  ;;  %v465_v11 = vld [vmem:[%s1126_s5 + $0x10] sm:$0xff]  ;;  %v540_v12 = vld [vmem:[%s1128_s7 + $0x18] sm:$0xff] }
  0x19   : > { %393 = vperm.xlu0 %776, %v370_v2   ;;  %383 = vperm.xlu2 %779, %v368_v3   ;;  %v371_v10 = vld [vmem:[%s1124_s3] sm:$0xff]  ;;  %v538_v13 = vld [vmem:[%s1128_s7 + $0x8] sm:$0xff]  ;;  %v466_v25 = vld [vmem:[%s1126_s5 + $0x18] sm:$0xff]  ;;  %p830_p13 = pneg %p829_p12 }
  0x1a   : > { %v785_v17 = vld [vmem:[%s363_s19] ss:$0 sm:$0xff]  ;;  %v464_v40 = vld [vmem:[%s1126_s5 + $0x8] sm:$0xff]  ;;  %v539_v41 = vld [vmem:[%s1128_s7 + $0x10] sm:$0xff]  ;;  %s831_s19 = scalar_lea.hbm %s1131_s10, 2 }
  0x1b   : > { %v786_v19 = vld [vmem:[%s366_s26] ss:$0 sm:$0xff]  ;;  %v460_v53 = vld [vmem:[%s1125_s4 + $0x8] sm:$0xff]  ;;  %v461_v56 = vld [vmem:[%s1125_s4 + $0x10] sm:$0xff]  ;;  %s359_s26 = sand.u32 1, %s865_s16   ;;  %p833_p1 = scmp.lt.s32.totalorder %s831_s19, %s827_s30 }
  0x1c   : > { %v463_v33 = vld [vmem:[%s1126_s5] sm:$0xff]  ;;  %v462_v57 = vld [vmem:[%s1125_s4 + $0x18] sm:$0xff]  ;;  %s360_s21 = scalar_lea.vmem [#allocation3], %s359_s26  ;;  %s639_s28 = scalar_lea.sflag [#allocation4], %s359_s26 }
  0x1d   : > { %v607_v50 = vld [vmem:[#allocation2] sm:$0x1]  ;;  %s649_s22 = sshll.u32 %s360_s21, 4  ;;  %p834_p2 = por %p833_p1, %p832_p0  ;;  %s650_s22 = int_to_ptr.vmem [resolvable:$true] %s649_s22 }
  0x1e   : > { %v537_v51 = vld [vmem:[%s1128_s7] sm:$0xff] }
  0x1f   : > { %v459_v54 = vld [vmem:[%s1125_s4] sm:$0xff]  ;;  %p835_p3 = pnand %p834_p2, %p830_p13 }
  0x20   : > { %778 = vset.pattern.permute.xlu1 %v876_v7 }
  0x21   : > { %388 = vperm.xlu0 %776, %v369_v5   ;;  %415 = vperm.xlu2 %779, %v373_v6  }
  0x22   : > { %441 = vperm.xlu1 %778, %v370_v2  }
  0x29   : > { %780 = vset.pattern.permute.xlu0 %v876_v7  ;;  %410 = vperm.xlu2 %779, %v372_v8  }
  0x2a   : > { %781 = vset.pattern.permute.xlu1 %v875_v4  ;;  %437 = vperm.xlu0 %780, %v369_v5  }
  0x2b   : > { %378 = vperm.xlu1 %781, %v367_v9  }
  0x31   : > { %405 = vperm.xlu2 %779, %v371_v10   ;;  %v534_v10 = vld [vmem:[%s1127_s6 + $0x8] sm:$0xff] }
  0x32   : > { %429 = vperm.xlu0 %780, %v367_v9   ;;  %v533_v9 = vld [vmem:[%s1127_s6] sm:$0xff] }
  0x33   : > { %782 = vset.pattern.permute.xlu1 %v876_v7 }
  0x34   : > { %433 = vperm.xlu1 %782, %v368_v3  }
  0x39   : > { %479 = vperm.xlu2 %779, %v465_v11  }
  0x3a   : > { %784 = vset.pattern.permute.xlu0 %v875_v4 }
  0x3b   : > { %474 = vperm.xlu0 %784, %v464_v40  }
  0x3c   : > { %783 = vset.pattern.permute.xlu1 %v875_v4 }
  0x3d   : > { %484 = vperm.xlu1 %783, %v466_v25  }
  0x41   : > { %558 = vperm.xlu2 %779, %v540_v12   ;;  %v535_v12 = vld [vmem:[%s1127_s6 + $0x10] sm:$0xff] }
  0x43   : > { %543 = vperm.xlu0 %784, %v537_v51  }
  0x45   : > { %469 = vperm.xlu1 %783, %v463_v33  }
  0x49   : > { %548 = vperm.xlu2 %779, %v538_v13   ;;  %v536_v13 = vld [vmem:[%s1127_s6 + $0x18] sm:$0xff] }
  0x4d   : > { %553 = vperm.xlu1 %783, %v539_v41  }
  0x55   : > { %610 = vperm.xlu1 %783, %v607_v50  }
  0x73   : > { %v384_v14 = vpop.permute.xlu2 %383 }
  0x74   : > { %v400_v36 = vmul.f32 %v785_v17, %v384_v14 }
  0x7b   : > { %v416_v20 = vpop.permute.xlu2 %415 }
  0x83   : > { %v411_v28 = vpop.permute.xlu2 %410 }
  0x84   : > { %v424_v45 = vadd.f32 %v411_v28, %v400_v36 }
  0x8a   : > { %v421_v15 = vpop.permute.xlu1 %420 }
  0x8b   : > { %v394_v16 = vpop.permute.xlu0 %393  ;;  %v406_v42 = vpop.permute.xlu2 %405 }
  0x8c   : > { %v402_v18 = vmul.f32 %v785_v17, %v394_v16 }
  0x8e   : > { %v426_v23 = vadd.f32 %v421_v15, %v402_v18 }
  0x93   : > { %v389_v21 = vpop.permute.xlu0 %388  ;;  %v480_v61 = vpop.permute.xlu2 %479 }
  0x94   : > { %v442_v22 = vpop.permute.xlu1 %441  ;;  %v401_v27 = vmul.f32 %v785_v17, %v389_v21 }
  0x95   : > { %v450_v24 = vmul.f32 %v786_v19, %v442_v22 }
  0x96   : > { %v425_v30 = vadd.f32 %v416_v20, %v401_v27 }
  0x97   : > { %v454_v26 = vadd.f32 %v450_v24, %v426_v23 }
  0x99   : > { %787 = vtanh.f32 %v454_v26 }
  0x9b   : > { %v559_v15 = vpop.permute.xlu2 %558 }
  0x9c   : > { %v438_v29 = vpop.permute.xlu0 %437 }
  0x9d   : > { %v449_v31 = vmul.f32 %v786_v19, %v438_v29  ;;  %v379_v32 = vpop.permute.xlu1 %378  ;;  %v606_v29 = vld [vmem:[%s1129_s8] sm:$0x1] }
  0x9e   : > { %v399_v37 = vmul.f32 %v785_v17, %v379_v32 }
  0x9f   : > { %v788_v34 = vpop.eup %787  ;;  %v453_v35 = vadd.f32 %v449_v31, %v425_v30 }
  0xa0   : > { %512 = vmatpush.msra.mxu0 %v788_v34  ;;  %727 = vmatpush.msra.mxu3 %v788_v34  ;;  %v423_v46 = vadd.f32 %v406_v42, %v399_v37 }
  0xa1   : > { %789 = vtanh.f32 %v453_v35 }
  0xa3   : > { %v549_v21 = vpop.permute.xlu2 %548 }
  0xa4   : > { %v430_v38 = vpop.permute.xlu0 %429 }
  0xa5   : > { %v447_v39 = vmul.f32 %v786_v19, %v430_v38 }
  0xa6   : > { %v434_v43 = vpop.permute.xlu1 %433 }
  0xa7   : > { %v790_v44 = vpop.eup %789  ;;  %v448_v47 = vmul.f32 %v786_v19, %v434_v43  ;;  %v451_v48 = vadd.f32 %v447_v39, %v423_v46 }
  0xa8   : > { %513 = vmatpush.msra.mxu0 %v790_v44  ;;  %728 = vmatpush.msra.mxu3 %v790_v44 }
  0xa9   : > { %v452_v49 = vadd.f32 %v448_v47, %v424_v45 }
  0xab   : > { %791 = vtanh.f32 %v452_v49 }
  0xac   : > { %793 = vtanh.f32 %v451_v48 }
  0xad   : > { %v475_v62 = vpop.permute.xlu0 %474 }
  0xaf   : > { %v485_v60 = vpop.permute.xlu1 %484 }
  0xb1   : > { %v792_v52 = vpop.eup %791 }
  0xb2   : > { %514 = vmatpush.msra.mxu0 %v792_v52  ;;  %729 = vmatpush.msra.mxu3 %v792_v52  ;;  %v794_v55 = vpop.eup %793 }
  0xb4   : > { %515 = vmatpush.msra.mxu0 %v794_v55  ;;  %730 = vmatpush.msra.mxu3 %v794_v55 }
  0xb5   : > { %717 = vmatmul.msk.f32.vlgmr.msra.gmra.mxu3 %vm487_vm0, %v460_v53  ;;  %716 = vmatmul.msk.f32.vlgmr.msra.gmra.mxu0 %vm487_vm0, %v459_v54  ;;  %v544_v24 = vpop.permute.xlu0 %543 }
  0xb7   : > { %v470_v4 = vpop.permute.xlu1 %469 }
  0xbd   : > { %718 = vmatmul.msk.f32.gmra.mxu3 %vm487_vm0, %v461_v56 }
  0xbf   : > { %v554_v17 = vpop.permute.xlu1 %553 }
  0xc5   : > { %719 = vmatmul.msk.f32.gmra.mxu3 %vm487_vm0, %v462_v57 }
  0xc7   : > { %v611_v31 = vpop.permute.xlu1 %610 }
  0xc8   : > { %v613_v32 = vperm.slane %v611_v31, 0 }
 0x132   : > { %v517_v2 = vpop.f32.mrf.mxu0 }
 0x133   : > { %v518_v5 = vadd.f32 %v517_v2, %v470_v4 }
 0x138   : > { %v520_v58 = vpop.f32.mrf.mxu3 }
 0x139   : > { %v521_v3 = vadd.f32 %v520_v58, %v475_v62 }
 0x140   : > { %v523_v59 = vpop.f32.mrf.mxu3 }
 0x141   : > { %v524_v0 = vadd.f32 %v523_v59, %v480_v61 }
 0x148   : > { %v526_v63 = vpop.f32.mrf.mxu3 }
 0x149   : > { %v527_v1 = vadd.f32 %v526_v63, %v485_v60 }
 0x14b   : > { %795 = vtanh.f32 %v527_v1 }
 0x14c   : > { %797 = vtanh.f32 %v524_v0 }
 0x14d   : > { %799 = vtanh.f32 %v521_v3 }
 0x14e   : > { %801 = vtanh.f32 %v518_v5 }
 0x151   : > { %v796_v6 = vpop.eup %795 }
 0x152   : > { %585 = vmatpush.msrb.mxu0 %v796_v6  ;;  %731 = vmatpush.msra.mxu1 %v796_v6  ;;  %v798_v7 = vpop.eup %797 }
 0x153   : > { %v800_v8 = vpop.eup %799 }
 0x154   : > { %586 = vmatpush.msrb.mxu0 %v798_v7  ;;  %732 = vmatpush.msra.mxu1 %v798_v7  ;;  %v802_v11 = vpop.eup %801 }
 0x156   : > { %587 = vmatpush.msrb.mxu0 %v800_v8  ;;  %733 = vmatpush.msra.mxu1 %v800_v8 }
 0x158   : > { %588 = vmatpush.msrb.mxu0 %v802_v11  ;;  %734 = vmatpush.msra.mxu1 %v802_v11 }
 0x159   : > { %720 = vmatmul.msk.f32.vlgmr.msrb.gmra.mxu0 %vm487_vm0, %v533_v9  ;;  %721 = vmatmul.msk.f32.vlgmr.msra.gmra.mxu1 %vm487_vm0, %v534_v10 }
 0x161   : > { %722 = vmatmul.msk.f32.gmra.mxu1 %vm487_vm0, %v535_v12 }
 0x169   : > { %723 = vmatmul.msk.f32.gmra.mxu1 %vm487_vm0, %v536_v13 }
 0x1d6   : > { %v593_v14 = vpop.f32.mrf.mxu1  ;;  %v590_v22 = vpop.f32.mrf.mxu0 }
 0x1d7   : > { %v594_v23 = vadd.f32 %v593_v14, %v549_v21  ;;  %v591_v25 = vadd.f32 %v590_v22, %v544_v24 }
 0x1de   : > { %v596_v16 = vpop.f32.mrf.mxu1 }
 0x1df   : > { %v597_v19 = vadd.f32 %v596_v16, %v554_v17 }
 0x1e6   : > { %v599_v18 = vpop.f32.mrf.mxu1 }
 0x1e7   : > { %v600_v20 = vadd.f32 %v599_v18, %v559_v15 }
 0x1e9   : > { %803 = vtanh.f32 %v600_v20 }
 0x1ea   : > { %805 = vtanh.f32 %v597_v19 }
 0x1eb   : > { %807 = vtanh.f32 %v594_v23 }
 0x1ec   : > { %809 = vtanh.f32 %v591_v25 }
 0x1ef   : > { %v804_v26 = vpop.eup %803 }
 0x1f0   : > { %629 = vmatpush.msra.mxu2 %v804_v26  ;;  %v806_v27 = vpop.eup %805 }
 0x1f1   : > { %v808_v28 = vpop.eup %807 }
 0x1f2   : > { %630 = vmatpush.msra.mxu2 %v806_v27  ;;  %v810_v30 = vpop.eup %809 }
 0x1f4   : > { %631 = vmatpush.msra.mxu2 %v808_v28 }
 0x1f6   : > { %632 = vmatpush.msra.mxu2 %v810_v30 }
 0x1f7   : > { %724 = vmatmul.msk.f32.vlgmr.msra.gmra.mxu2 %vm487_vm0, %v606_v29 }
 0x27a   : > { %v634_v33 = vpop.f32.mrf.mxu2 }
 0x27b   : > { %v635_v34 = vadd.f32 %v634_v33, %v613_v32 }
 0x27d   : > { %637 = vst [vmem:[%s360_s21] sm:$0x1] %v635_v34 }
 0x27e   : > { %838 = shalt.err (!%p835_p3)
}
 0x27f   : > { %735 = dma.vmem_to_hbm [thread:$0]  (%p973_p5), %s650_s22, 16, %s652_s27, %s639_s28  }
 0x280 PF: > { %p741_p4 = scmp.ge.s32.totalorder %s873_s18, 2  ;;  %s663_s26 = sand.u32 1, %s861_s15  }
 0x281   : > { %s664_s14 = scalar_lea.sflag [#allocation4], %s663_s26 }
 0x282   : > { %p738_p7 = pnand %p741_p4, %p977_p6 }
 0x284   : > { %p739_p8 = pneg %p738_p7 }
 0x286   : > { %856 = dma.done.wait (%p739_p8), %s664_s14, 16  }
 0x287   : > { %858 = vsyncadd (%p739_p8), %s664_s14, 4294967280  ;;  %p22_p9 = scmp.ge.s32.totalorder %s960_s20, 4   ;;  %s1134_s15 = smov %s865_s16 }
 0x288   : > { %s1135_s16 = smov %s869_s17  ;;  %s1136_s17 = smov %s971_s23 }
 0x289   : > { %s1137_s18 = smov %s960_s20  ;;  %24 = sbr.rel (!%p22_p9) target bundleno = 6 (0x6), region = 98 }
 0x28e   :  { %669 = vsyncpa [#allocation4], 1 }
 0x28f   :  { %671 = vsyncpa [#allocation4 + $0x1], 1 }

</bundles_post_ra>
